<compile_context>
chip_gen: v6e
topology: v6e:2x2x1
jax: 0.10.0
libtpu: 0.0.40
codegen_flags: <defaults>
</compile_context>

<pallas_src>
import functools

import jax
import jax.numpy as jnp
from jax.experimental import pallas as pl
from jax.experimental.pallas import tpu as pltpu


def _round_up(x, m):
    return (x + m - 1) // m * m


# --------------------------------------------------------------------------
# Kernel 1: conv matmul fused with per-channel batch statistics.
# --------------------------------------------------------------------------
def _conv_stats_kernel(a_ref, b_ref, y_ref, sum_ref, sq_ref):
    # a: (tm, K) bf16 patch tile, b: (K, Cp) bf16 weights -> y: (tm, Cp) f32.
    # sum/sq: (1, Cp) f32 accumulators resident across the M grid axis.
    @pl.when(pl.program_id(1) == 0)
    def _():
        sum_ref[...] = jnp.zeros_like(sum_ref)
        sq_ref[...] = jnp.zeros_like(sq_ref)

    y = jnp.dot(a_ref[...], b_ref[...], preferred_element_type=jnp.float32)
    y_ref[...] = y
    # Stats are VPU/XLU work that hides under the MXU: effectively free filler,
    # and it saves a full HBM re-read of y by a separate stats kernel.
    sum_ref[...] += jnp.sum(y, axis=0, keepdims=True)
    sq_ref[...] += jnp.sum(y * y, axis=0, keepdims=True)


def conv_with_stats(patches, w_mat, *, tm):
    """patches: (G, Mp, K) bf16, w_mat: (G, K, Cp) bf16 ->
       y: (G, Mp, Cp) f32, sum: (G, 1, Cp) f32, sq: (G, 1, Cp) f32."""
    G, Mp, K = patches.shape
    _, _, Cp = w_mat.shape
    # TODO(synk): for very large K = k*k*C_in_g (beyond the VMEM budget), add a K
    # grid axis with an f32 VMEM accumulator scratch instead of full-K blocks.
    return pl.pallas_call(
        _conv_stats_kernel,
        out_shape=(jax.ShapeDtypeStruct((G, Mp, Cp), jnp.float32),
                   jax.ShapeDtypeStruct((G, 1, Cp), jnp.float32),
                   jax.ShapeDtypeStruct((G, 1, Cp), jnp.float32)),
        grid_spec=pltpu.PrefetchScalarGridSpec(
            num_scalar_prefetch=0,
            grid=(G, Mp // tm),
            in_specs=[pl.BlockSpec((None, tm, K), lambda g, i: (g, i, 0)),
                      pl.BlockSpec((None, K, Cp), lambda g, i: (g, 0, 0))],
            out_specs=(pl.BlockSpec((None, tm, Cp), lambda g, i: (g, i, 0)),
                       pl.BlockSpec((None, 1, Cp), lambda g, i: (g, 0, 0)),
                       pl.BlockSpec((None, 1, Cp), lambda g, i: (g, 0, 0)))),
        compiler_params=pltpu.CompilerParams(
            # M axis carries the stats accumulators -> "arbitrary"; groups are
            # independent -> "parallel" (megacore-shardable).
            dimension_semantics=("parallel", "arbitrary"),
            vmem_limit_bytes=48 * 1024 * 1024),
    )(patches, w_mat)


# --------------------------------------------------------------------------
# Kernel 2: fused BatchNorm affine + ReLU, in place over y.
# --------------------------------------------------------------------------
def _bn_relu_kernel(y_ref, scale_ref, bias_ref, o_ref):
    # Keep everything in f32 vregs; single multiply-add + max before the store.
    o_ref[...] = jnp.maximum(y_ref[...] * scale_ref[...] + bias_ref[...], 0.0)


def bn_relu(y, scale, bias, *, tm):
    G, Mp, Cp = y.shape
    return pl.pallas_call(
        _bn_relu_kernel,
        out_shape=jax.ShapeDtypeStruct((G, Mp, Cp), jnp.float32),
        grid_spec=pltpu.PrefetchScalarGridSpec(
            num_scalar_prefetch=0,
            grid=(G, Mp // tm),
            in_specs=[pl.BlockSpec((None, tm, Cp), lambda g, i: (g, i, 0)),
                      pl.BlockSpec((None, 1, Cp), lambda g, i: (g, 0, 0)),
                      pl.BlockSpec((None, 1, Cp), lambda g, i: (g, 0, 0))],
            out_specs=pl.BlockSpec((None, tm, Cp), lambda g, i: (g, i, 0))),
        input_output_aliases={0: 0},   # write the result in place over y
        compiler_params=pltpu.CompilerParams(
            dimension_semantics=("parallel", "parallel"),
            vmem_limit_bytes=48 * 1024 * 1024),
    )(y, scale, bias)


# ------------------------------------------------------------------ im2col glue
def _im2col(x_nhwc, k, stride, dilation):
    N, H, W, C = x_nhwc.shape
    pad = ((k - 1) // 2) * dilation
    xp = jnp.pad(x_nhwc, ((0, 0), (pad, pad), (pad, pad), (0, 0)))
    Hp, Wp = H + 2 * pad, W + 2 * pad
    OH = (Hp - dilation * (k - 1) - 1) // stride + 1
    OW = (Wp - dilation * (k - 1) - 1) // stride + 1
    cols = []
    for kh in range(k):
        for kw in range(k):
            h0, w0 = kh * dilation, kw * dilation
            sl = xp[:,
                    h0:h0 + (OH - 1) * stride + 1:stride,
                    w0:w0 + (OW - 1) * stride + 1:stride,
                    :]
            cols.append(sl)
    patches = jnp.stack(cols, axis=3)                 # (N, OH, OW, k*k, C)
    return patches, OH, OW


def _pick_tm(M, K, Cp, tm_max, budget_bytes):
    """Largest multiple-of-8 row tile whose double-buffered tiles fit the VMEM budget."""
    tm = min(tm_max, _round_up(M, 8))
    while tm > 8:
        need = (2 * tm * K * 2          # patch tile, bf16, double buffered
                + 2 * K * Cp * 2        # weight tile, bf16, double buffered
                + 2 * tm * Cp * 4       # y tile, f32, double buffered
                + 4 * 2 * Cp * 4)       # stats accumulators
        if need <= budget_bytes:
            break
        tm = max(8, _round_up(tm // 2, 8))
    return tm


# ------------------------------------------------------------------ ConvBlock
@functools.partial(jax.jit, static_argnames=(
    "stride", "dilation", "groups", "eps", "tm_max", "compute_dtype"))
def conv_block_forward(x_nchw, w, gamma, beta, *, stride=1, dilation=1,
                       groups=1, eps=1e-5, tm_max=512,
                       compute_dtype=jnp.bfloat16):
    """Conv2d(bias=False) -> BatchNorm2d (batch stats, affine) -> ReLU. NCHW in/out."""
    N, C_in, H, W_sp = x_nchw.shape
    C_out, C_in_g, KH, KW = w.shape
    assert KH == KW and C_in == C_in_g * groups and C_out % groups == 0
    C_out_g = C_out // groups
    K = KH * KW * C_in_g
    Cp = _round_up(C_out_g, 128)                      # lane-dense channel tile

    # --- im2col in the MXU's native bf16 (halves HBM traffic for patches) ---
    # TODO(synk): fuse patch extraction (halo-DMA of the NHWC input tile) into the
    # matmul kernel to avoid materializing the k*k-times-larger patches in HBM.
    x_nhwc = jnp.transpose(x_nchw, (0, 2, 3, 1)).astype(compute_dtype)
    patches, OH, OW = _im2col(x_nhwc, KH, stride, dilation)   # (N,OH,OW,k*k,C_in)
    M = N * OH * OW
    tm = _pick_tm(M, K, Cp, tm_max, budget_bytes=36 * 1024 * 1024)
    Mp = _round_up(M, tm)

    # (N,OH,OW,k*k,C_in) -> (groups, Mp, K); zero-row padding is harmless because
    # the stats below divide by the true M.
    patches = patches.reshape(M, KH * KW, groups, C_in_g)
    patches = jnp.transpose(patches, (2, 0, 1, 3)).reshape(groups, M, K)
    patches = jnp.pad(patches, ((0, 0), (0, Mp - M), (0, 0)))

    # Weights: (C_out, C_in_g, KH, KW) -> (groups, K, Cp), zero-padded channels,
    # K-ordering (kh, kw, c_in) matching the patch layout.
    w_g = w.reshape(groups, C_out_g, C_in_g, KH, KW)
    w_mat = jnp.transpose(w_g, (0, 3, 4, 2, 1)).reshape(groups, K, C_out_g)
    w_mat = jnp.pad(w_mat, ((0, 0), (0, 0), (0, Cp - C_out_g))).astype(compute_dtype)

    # --- fused conv matmul + batch stats (single pass over y) ---
    y, s, sq = conv_with_stats(patches, w_mat, tm=tm)

    # BatchNorm2d (training mode): biased variance over (N, H, W) per channel.
    mean = s / M
    var = jnp.maximum(sq / M - mean * mean, 0.0)      # clamp: cancellation-safe
    g_pad = jnp.pad(gamma.reshape(groups, 1, C_out_g).astype(jnp.float32),
                    ((0, 0), (0, 0), (0, Cp - C_out_g)))
    b_pad = jnp.pad(beta.reshape(groups, 1, C_out_g).astype(jnp.float32),
                    ((0, 0), (0, 0), (0, Cp - C_out_g)))
    scale = g_pad * jax.lax.rsqrt(var + eps)
    bias = b_pad - mean * scale

    out = bn_relu(y, scale, bias, tm=tm)              # (groups, Mp, Cp), aliases y

    out = out[:, :M, :C_out_g]                        # drop M / channel padding
    out = jnp.transpose(out, (1, 0, 2)).reshape(N, OH, OW, C_out)
    return jnp.transpose(out, (0, 3, 1, 2))           # back to NCHW


# ------------------------------------------------------------------ reference
def conv_block_reference(x, w, gamma, beta, *, stride=1, dilation=1, groups=1, eps=1e-5):
    k = w.shape[-1]
    pad = ((k - 1) // 2) * dilation
    y = jax.lax.conv_general_dilated(
        x.astype(jnp.float32), w.astype(jnp.float32),
        window_strides=(stride, stride),
        padding=[(pad, pad), (pad, pad)],
        rhs_dilation=(dilation, dilation),
        dimension_numbers=("NCHW", "OIHW", "NCHW"),
        feature_group_count=groups)
    mean = jnp.mean(y, axis=(0, 2, 3), keepdims=True)
    var = jnp.mean((y - mean) ** 2, axis=(0, 2, 3), keepdims=True)
    yn = (y - mean) / jnp.sqrt(var + eps)
    yn = yn * gamma.reshape(1, -1, 1, 1) + beta.reshape(1, -1, 1, 1)
    return jnp.maximum(yn, 0.0)


if __name__ == "__main__":
    key = jax.random.PRNGKey(0)
    k_x, k_w, k_g, k_b = jax.random.split(key, 4)

    # ConvBlock(C_in=4, C_out=8, kernel_size=3, stride=1, dilation=1, groups=1, affine=True)
    C_in, C_out, ksize, stride, dilation, groups = 4, 8, 3, 1, 1, 1
    x = jax.random.normal(k_x, (2, C_in, 16, 16), dtype=jnp.float32)
    w = jax.random.normal(k_w, (C_out, C_in // groups, ksize, ksize), dtype=jnp.float32) * 0.1
    gamma = 1.0 + 0.1 * jax.random.normal(k_g, (C_out,), dtype=jnp.float32)
    beta = 0.1 * jax.random.normal(k_b, (C_out,), dtype=jnp.float32)

    out = conv_block_forward(x, w, gamma, beta, stride=stride,
                             dilation=dilation, groups=groups)
    out = jax.block_until_ready(out)

    # (1) Module semantics check vs. exact f32 reference. Tolerance is loosened
    #     only because the kernel feeds the MXU bf16 operands (f32 accumulation).
    ref = conv_block_reference(x, w, gamma, beta, stride=stride,
                               dilation=dilation, groups=groups)
    assert out.shape == ref.shape == (2, C_out, 16, 16)
    assert jnp.allclose(out, ref, atol=2e-2, rtol=2e-2), \
        float(jnp.max(jnp.abs(out - ref)))

    # (2) Tight check vs. a reference whose inputs are pre-rounded to bf16 —
    #     isolates the intended input quantization from any kernel bug.
    ref_bf16 = conv_block_reference(
        x.astype(jnp.bfloat16).astype(jnp.float32),
        w.astype(jnp.bfloat16).astype(jnp.float32),
        gamma, beta, stride=stride, dilation=dilation, groups=groups)
    assert jnp.allclose(out, ref_bf16, atol=1e-3, rtol=1e-3), \
        float(jnp.max(jnp.abs(out - ref_bf16)))

    print("KERNEL_OK")
</pallas_src>

<mosaic_0001>
module attributes {stable_mosaic.version = 11 : i64} {
  func.func @_conv_stats_kernel(%arg0: i32, %arg1: i32, %arg2: memref<1x512x36xbf16, #tpu.memory_space<vmem>>, %arg3: memref<1x36x128xbf16, #tpu.memory_space<vmem>>, %arg4: memref<1x512x128xf32, #tpu.memory_space<vmem>>, %arg5: memref<1x1x128xf32, #tpu.memory_space<vmem>>, %arg6: memref<1x1x128xf32, #tpu.memory_space<vmem>>) attributes {dimension_semantics = [#tpu.dimension_semantics<parallel>, #tpu.dimension_semantics<arbitrary>], iteration_bounds = array<i64: 1, 1>, scalar_prefetch = 0 : i64, scratch_operands = 0 : i64, tpu.core_type = #tpu.core_type<tc>, window_params = [{transform_indices = @transform_0, window_bounds = array<i64: 1, 512, 36>}, {transform_indices = @transform_1, window_bounds = array<i64: 1, 36, 128>}, {transform_indices = @transform_2, window_bounds = array<i64: 1, 512, 128>}, {transform_indices = @transform_3, window_bounds = array<i64: 1, 1, 128>}, {transform_indices = @transform_4, window_bounds = array<i64: 1, 1, 128>}]} {
    %c0_i32 = arith.constant 0 : i32
    %0 = arith.cmpi eq, %arg1, %c0_i32 : i32
    %1 = arith.extui %0 : i1 to i32
    %c0_i32_0 = arith.constant 0 : i32
    %2 = arith.cmpi ne, %1, %c0_i32_0 : i32
    scf.if %2 {
      %cst_23 = arith.constant 0.000000e+00 : f32
      %28 = vector.broadcast %cst_23 : f32 to vector<1x128xf32>
      %c0_24 = arith.constant 0 : index
      %c0_25 = arith.constant 0 : index
      %c0_26 = arith.constant 0 : index
      %29 = vector.load %arg5[%c0_24, %c0_25, %c0_26] : memref<1x1x128xf32, #tpu.memory_space<vmem>>, vector<1x1x128xf32>
      %30 = vector.shape_cast %29 : vector<1x1x128xf32> to vector<1x128xf32>
      %31 = vector.shape_cast %28 : vector<1x128xf32> to vector<1x1x128xf32>
      tpu.vector_store %arg5[%c0_24, %c0_25, %c0_26], %31 {strides = array<i32>} : memref<1x1x128xf32, #tpu.memory_space<vmem>>, vector<1x1x128xf32>,
      %cst_27 = arith.constant 0.000000e+00 : f32
      %32 = vector.broadcast %cst_27 : f32 to vector<1x128xf32>
      %c0_28 = arith.constant 0 : index
      %c0_29 = arith.constant 0 : index
      %c0_30 = arith.constant 0 : index
      %33 = vector.load %arg6[%c0_28, %c0_29, %c0_30] : memref<1x1x128xf32, #tpu.memory_space<vmem>>, vector<1x1x128xf32>
      %34 = vector.shape_cast %33 : vector<1x1x128xf32> to vector<1x128xf32>
      %35 = vector.shape_cast %32 : vector<1x128xf32> to vector<1x1x128xf32>
      tpu.vector_store %arg6[%c0_28, %c0_29, %c0_30], %35 {strides = array<i32>} : memref<1x1x128xf32, #tpu.memory_space<vmem>>, vector<1x1x128xf32>,
    } else {
    }
    %c0 = arith.constant 0 : index
    %c0_1 = arith.constant 0 : index
    %c0_2 = arith.constant 0 : index
    %3 = vector.load %arg2[%c0, %c0_1, %c0_2] : memref<1x512x36xbf16, #tpu.memory_space<vmem>>, vector<1x512x36xbf16>
    %4 = vector.shape_cast %3 : vector<1x512x36xbf16> to vector<512x36xbf16>
    %c0_3 = arith.constant 0 : index
    %c0_4 = arith.constant 0 : index
    %c0_5 = arith.constant 0 : index
    %5 = vector.load %arg3[%c0_3, %c0_4, %c0_5] : memref<1x36x128xbf16, #tpu.memory_space<vmem>>, vector<1x36x128xbf16>
    %6 = vector.shape_cast %5 : vector<1x36x128xbf16> to vector<36x128xbf16>
    %cst = arith.constant dense<0.000000e+00> : vector<512x128xf32>
    %7 = tpu.matmul %4, %6, %cst {dimension_numbers = #tpu.dot_dimension_numbers<[1], [0], [0], [1], [0, 0, 1, 1], [], []>} : vector<512x36xbf16>, vector<36x128xbf16>, vector<512x128xf32> -> vector<512x128xf32>
    %c0_6 = arith.constant 0 : index
    %c0_7 = arith.constant 0 : index
    %c0_8 = arith.constant 0 : index
    %8 = vector.load %arg4[%c0_6, %c0_7, %c0_8] : memref<1x512x128xf32, #tpu.memory_space<vmem>>, vector<1x512x128xf32>
    %9 = vector.shape_cast %8 : vector<1x512x128xf32> to vector<512x128xf32>
    %10 = vector.shape_cast %7 : vector<512x128xf32> to vector<1x512x128xf32>
    tpu.vector_store %arg4[%c0_6, %c0_7, %c0_8], %10 {strides = array<i32>} : memref<1x512x128xf32, #tpu.memory_space<vmem>>, vector<1x512x128xf32>,
    %c0_9 = arith.constant 0 : index
    %c0_10 = arith.constant 0 : index
    %c0_11 = arith.constant 0 : index
    %11 = vector.load %arg5[%c0_9, %c0_10, %c0_11] : memref<1x1x128xf32, #tpu.memory_space<vmem>>, vector<1x1x128xf32>
    %12 = vector.shape_cast %11 : vector<1x1x128xf32> to vector<1x128xf32>
    %cst_12 = arith.constant dense<0.000000e+00> : vector<128xf32>
    %13 = vector.multi_reduction <add>, %7, %cst_12 [0] : vector<512x128xf32> to vector<128xf32>
    %14 = vector.shape_cast %13 : vector<128xf32> to vector<1x128xf32>
    %15 = arith.addf %12, %14 : vector<1x128xf32>
    %c0_13 = arith.constant 0 : index
    %c0_14 = arith.constant 0 : index
    %c0_15 = arith.constant 0 : index
    %16 = vector.load %arg5[%c0_13, %c0_14, %c0_15] : memref<1x1x128xf32, #tpu.memory_space<vmem>>, vector<1x1x128xf32>
    %17 = vector.shape_cast %16 : vector<1x1x128xf32> to vector<1x128xf32>
    %18 = vector.shape_cast %15 : vector<1x128xf32> to vector<1x1x128xf32>
    tpu.vector_store %arg5[%c0_13, %c0_14, %c0_15], %18 {strides = array<i32>} : memref<1x1x128xf32, #tpu.memory_space<vmem>>, vector<1x1x128xf32>,
    %c0_16 = arith.constant 0 : index
    %c0_17 = arith.constant 0 : index
    %c0_18 = arith.constant 0 : index
    %19 = vector.load %arg6[%c0_16, %c0_17, %c0_18] : memref<1x1x128xf32, #tpu.memory_space<vmem>>, vector<1x1x128xf32>
    %20 = vector.shape_cast %19 : vector<1x1x128xf32> to vector<1x128xf32>
    %21 = arith.mulf %7, %7 : vector<512x128xf32>
    %cst_19 = arith.constant dense<0.000000e+00> : vector<128xf32>
    %22 = vector.multi_reduction <add>, %21, %cst_19 [0] : vector<512x128xf32> to vector<128xf32>
    %23 = vector.shape_cast %22 : vector<128xf32> to vector<1x128xf32>
    %24 = arith.addf %20, %23 : vector<1x128xf32>
    %c0_20 = arith.constant 0 : index
    %c0_21 = arith.constant 0 : index
    %c0_22 = arith.constant 0 : index
    %25 = vector.load %arg6[%c0_20, %c0_21, %c0_22] : memref<1x1x128xf32, #tpu.memory_space<vmem>>, vector<1x1x128xf32>
    %26 = vector.shape_cast %25 : vector<1x1x128xf32> to vector<1x128xf32>
    %27 = vector.shape_cast %24 : vector<1x128xf32> to vector<1x1x128xf32>
    tpu.vector_store %arg6[%c0_20, %c0_21, %c0_22], %27 {strides = array<i32>} : memref<1x1x128xf32, #tpu.memory_space<vmem>>, vector<1x1x128xf32>,
    return
  }
  func.func @transform_0(%arg0: i32, %arg1: i32) -> (i32, i32, i32) {
    %c0_i32 = arith.constant 0 : i32
    %c0_i32_0 = arith.constant 0 : i32
    return %arg0, %arg1, %c0_i32 : i32, i32, i32
  }
  func.func @transform_1(%arg0: i32, %arg1: i32) -> (i32, i32, i32) {
    %c0_i32 = arith.constant 0 : i32
    %c0_i32_0 = arith.constant 0 : i32
    %c0_i32_1 = arith.constant 0 : i32
    return %arg0, %c0_i32, %c0_i32_0 : i32, i32, i32
  }
  func.func @transform_2(%arg0: i32, %arg1: i32) -> (i32, i32, i32) {
    %c0_i32 = arith.constant 0 : i32
    %c0_i32_0 = arith.constant 0 : i32
    return %arg0, %arg1, %c0_i32 : i32, i32, i32
  }
  func.func @transform_3(%arg0: i32, %arg1: i32) -> (i32, i32, i32) {
    %c0_i32 = arith.constant 0 : i32
    %c0_i32_0 = arith.constant 0 : i32
    %c0_i32_1 = arith.constant 0 : i32
    return %arg0, %c0_i32, %c0_i32_0 : i32, i32, i32
  }
  func.func @transform_4(%arg0: i32, %arg1: i32) -> (i32, i32, i32) {
    %c0_i32 = arith.constant 0 : i32
    %c0_i32_0 = arith.constant 0 : i32
    %c0_i32_1 = arith.constant 0 : i32
    return %arg0, %c0_i32, %c0_i32_0 : i32, i32, i32
  }
}

module attributes {stable_mosaic.version = 11 : i64} {
  func.func @_bn_relu_kernel(%arg0: i32, %arg1: i32, %arg2: memref<1x512x128xf32, #tpu.memory_space<vmem>>, %arg3: memref<1x1x128xf32, #tpu.memory_space<vmem>>, %arg4: memref<1x1x128xf32, #tpu.memory_space<vmem>>, %arg5: memref<1x512x128xf32, #tpu.memory_space<vmem>>) attributes {dimension_semantics = [#tpu.dimension_semantics<parallel>, #tpu.dimension_semantics<parallel>], iteration_bounds = array<i64: 1, 1>, scalar_prefetch = 0 : i64, scratch_operands = 0 : i64, tpu.core_type = #tpu.core_type<tc>, window_params = [{transform_indices = @transform_0, window_bounds = array<i64: 1, 512, 128>}, {transform_indices = @transform_1, window_bounds = array<i64: 1, 1, 128>}, {transform_indices = @transform_2, window_bounds = array<i64: 1, 1, 128>}, {transform_indices = @transform_3, window_bounds = array<i64: 1, 512, 128>}]} {
    %c0 = arith.constant 0 : index
    %c0_0 = arith.constant 0 : index
    %c0_1 = arith.constant 0 : index
    %0 = vector.load %arg2[%c0, %c0_0, %c0_1] : memref<1x512x128xf32, #tpu.memory_space<vmem>>, vector<1x512x128xf32>
    %1 = vector.shape_cast %0 : vector<1x512x128xf32> to vector<512x128xf32>
    %c0_2 = arith.constant 0 : index
    %c0_3 = arith.constant 0 : index
    %c0_4 = arith.constant 0 : index
    %2 = vector.load %arg3[%c0_2, %c0_3, %c0_4] : memref<1x1x128xf32, #tpu.memory_space<vmem>>, vector<1x1x128xf32>
    %3 = vector.shape_cast %2 : vector<1x1x128xf32> to vector<1x128xf32>
    %4 = vector.broadcast %3 : vector<1x128xf32> to vector<512x128xf32>
    %5 = arith.mulf %1, %4 : vector<512x128xf32>
    %c0_5 = arith.constant 0 : index
    %c0_6 = arith.constant 0 : index
    %c0_7 = arith.constant 0 : index
    %6 = vector.load %arg4[%c0_5, %c0_6, %c0_7] : memref<1x1x128xf32, #tpu.memory_space<vmem>>, vector<1x1x128xf32>
    %7 = vector.shape_cast %6 : vector<1x1x128xf32> to vector<1x128xf32>
    %8 = vector.broadcast %7 : vector<1x128xf32> to vector<512x128xf32>
    %9 = arith.addf %5, %8 : vector<512x128xf32>
    %cst = arith.constant 0.000000e+00 : f32
    %10 = vector.broadcast %cst : f32 to vector<512x128xf32>
    %11 = arith.maximumf %9, %10 : vector<512x128xf32>
    %c0_8 = arith.constant 0 : index
    %c0_9 = arith.constant 0 : index
    %c0_10 = arith.constant 0 : index
    %12 = vector.load %arg5[%c0_8, %c0_9, %c0_10] : memref<1x512x128xf32, #tpu.memory_space<vmem>>, vector<1x512x128xf32>
    %13 = vector.shape_cast %12 : vector<1x512x128xf32> to vector<512x128xf32>
    %14 = vector.shape_cast %11 : vector<512x128xf32> to vector<1x512x128xf32>
    tpu.vector_store %arg5[%c0_8, %c0_9, %c0_10], %14 {strides = array<i32>} : memref<1x512x128xf32, #tpu.memory_space<vmem>>, vector<1x512x128xf32>,
    return
  }
  func.func @transform_0(%arg0: i32, %arg1: i32) -> (i32, i32, i32) {
    %c0_i32 = arith.constant 0 : i32
    %c0_i32_0 = arith.constant 0 : i32
    return %arg0, %arg1, %c0_i32 : i32, i32, i32
  }
  func.func @transform_1(%arg0: i32, %arg1: i32) -> (i32, i32, i32) {
    %c0_i32 = arith.constant 0 : i32
    %c0_i32_0 = arith.constant 0 : i32
    %c0_i32_1 = arith.constant 0 : i32
    return %arg0, %c0_i32, %c0_i32_0 : i32, i32, i32
  }
  func.func @transform_2(%arg0: i32, %arg1: i32) -> (i32, i32, i32) {
    %c0_i32 = arith.constant 0 : i32
    %c0_i32_0 = arith.constant 0 : i32
    %c0_i32_1 = arith.constant 0 : i32
    return %arg0, %c0_i32, %c0_i32_0 : i32, i32, i32
  }
  func.func @transform_3(%arg0: i32, %arg1: i32) -> (i32, i32, i32) {
    %c0_i32 = arith.constant 0 : i32
    %c0_i32_0 = arith.constant 0 : i32
    return %arg0, %arg1, %c0_i32 : i32, i32, i32
  }
}

</mosaic_0001>

<bundles_post_ra>
// kernel: conv_block_forward.3
= control target key start
LH: loop header
LB: loop body
LE: loop exit
PB: predicated region body
PF: predicated region fallthrough
CT: control target
= control target key end

     0   :  { %s896_s0 = inlined_call_operand.vmem [shape: f32[1,512,128], index: 0, kind: input, shape index: {}, may-alias: {0,3}]   ;;  %s897_s1 = inlined_call_operand.vmem [shape: f32[1,1,128], index: 1, kind: input, shape index: {}]   ;;  %s898_s2 = inlined_call_operand.vmem [shape: f32[1,1,128], index: 2, kind: input, shape index: {}]   ;;  %s899_s3 = inlined_call_operand.vmem [shape: f32[1,512,128], index: 3, kind: output, shape index: {}, may-alias: {0,3}]  }
   0x1   :  { %v14_v0 = vld [vmem:[%s896_s0] sm:$0xff]  ;;  %v15_v4 = vld [vmem:[%s896_s0 + $0x8] sm:$0xff]  ;;  %v16_v5 = vld [vmem:[%s896_s0 + $0x10] sm:$0xff] }
   0x2   :  { %v380_v1 = vld [vmem:[%s897_s1] ss:$0 sm:$0xff]  ;;  %v17_v6 = vld [vmem:[%s896_s0 + $0x18] sm:$0xff]  ;;  %v19_v11 = vld [vmem:[%s896_s0 + $0x28] sm:$0xff] }
   0x3   :  { %v385_v2 = vld [vmem:[%s898_s2] ss:$0 sm:$0xff]  ;;  %v85_v3 = vmul.f32 %v380_v1, %v14_v0  ;;  %v86_v7 = vmul.f32 %v380_v1, %v15_v4  ;;  %v87_v8 = vmul.f32 %v380_v1, %v16_v5  ;;  %v88_v9 = vmul.f32 %v380_v1, %v17_v6  ;;  %v20_v12 = vld [vmem:[%s896_s0 + $0x30] sm:$0xff]  ;;  %v21_v17 = vld [vmem:[%s896_s0 + $0x38] sm:$0xff] }
   0x4   :  { %v18_v10 = vld [vmem:[%s896_s0 + $0x20] sm:$0xff]  ;;  %v90_v15 = vmul.f32 %v380_v1, %v19_v11  ;;  %v91_v16 = vmul.f32 %v380_v1, %v20_v12  ;;  %v92_v21 = vmul.f32 %v380_v1, %v21_v17  ;;  %v23_v27 = vld [vmem:[%s896_s0 + $0x48] sm:$0xff]  ;;  %v24_v28 = vld [vmem:[%s896_s0 + $0x50] sm:$0xff] }
   0x5   :  { %v156_v13 = vadd.f32 %v385_v2, %v85_v3  ;;  %v89_v14 = vmul.f32 %v380_v1, %v18_v10  ;;  %v157_v18 = vadd.f32 %v385_v2, %v86_v7  ;;  %v158_v19 = vadd.f32 %v385_v2, %v87_v8  ;;  %v22_v22 = vld [vmem:[%s896_s0 + $0x40] sm:$0xff]  ;;  %v25_v29 = vld [vmem:[%s896_s0 + $0x58] sm:$0xff]  ;;  %v27_v35 = vld [vmem:[%s896_s0 + $0x68] sm:$0xff] }
   0x6   :  { %v159_v20 = vadd.f32 %v385_v2, %v88_v9  ;;  %v161_v25 = vadd.f32 %v385_v2, %v90_v15  ;;  %v162_v26 = vadd.f32 %v385_v2, %v91_v16  ;;  %v163_v33 = vadd.f32 %v385_v2, %v92_v21  ;;  %v26_v34 = vld [vmem:[%s896_s0 + $0x60] sm:$0xff]  ;;  %v28_v36 = vld [vmem:[%s896_s0 + $0x70] sm:$0xff] }
   0x7   :  { %v220_v23 = vmax.f32 %v156_v13, 0.0  ;;  %v160_v24 = vadd.f32 %v385_v2, %v89_v14  ;;  %v221_v30 = vmax.f32 %v157_v18, 0.0  ;;  %v222_v31 = vmax.f32 %v158_v19, 0.0 }
   0x8   :  { %v223_v32 = vmax.f32 %v159_v20, 0.0  ;;  %v225_v38 = vmax.f32 %v161_v25, 0.0  ;;  %v226_v39 = vmax.f32 %v162_v26, 0.0  ;;  %v93_v40 = vmul.f32 %v380_v1, %v22_v22 }
   0x9   :  { %284 = vst [vmem:[%s899_s3] sm:$0xff] %v220_v23  ;;  %v224_v37 = vmax.f32 %v160_v24, 0.0  ;;  %v227_v42 = vmax.f32 %v163_v33, 0.0  ;;  %v94_v43 = vmul.f32 %v380_v1, %v23_v27  ;;  %v95_v44 = vmul.f32 %v380_v1, %v24_v28 }
   0xa   :  { %v96_v45 = vmul.f32 %v380_v1, %v25_v29  ;;  %v164_v46 = vadd.f32 %v385_v2, %v93_v40  ;;  %v97_v47 = vmul.f32 %v380_v1, %v26_v34  ;;  %v98_v48 = vmul.f32 %v380_v1, %v27_v35 }
   0xb   :  { %v99_v49 = vmul.f32 %v380_v1, %v28_v36  ;;  %v165_v50 = vadd.f32 %v385_v2, %v94_v43  ;;  %v166_v51 = vadd.f32 %v385_v2, %v95_v44 }
   0xc   :  { %v167_v52 = vadd.f32 %v385_v2, %v96_v45  ;;  %v228_v55 = vmax.f32 %v164_v46, 0.0  ;;  %v168_v56 = vadd.f32 %v385_v2, %v97_v47  ;;  %v169_v57 = vadd.f32 %v385_v2, %v98_v48 }
   0xd   :  { %v170_v58 = vadd.f32 %v385_v2, %v99_v49  ;;  %v229_v62 = vmax.f32 %v165_v50, 0.0  ;;  %v230_v63 = vmax.f32 %v166_v51, 0.0 }
   0xe   :  { %v231_v0 = vmax.f32 %v167_v52, 0.0  ;;  %v232_v7 = vmax.f32 %v168_v56, 0.0  ;;  %v233_v8 = vmax.f32 %v169_v57, 0.0 }
   0xf   :  { %v234_v9 = vmax.f32 %v170_v58, 0.0 }
  0x10   :  { %v29_v41 = vld [vmem:[%s896_s0 + $0x78] sm:$0xff] }
  0x11   :  { %285 = vst [vmem:[%s899_s3 + $0x8] sm:$0xff] %v221_v30  ;;  %286 = vst [vmem:[%s899_s3 + $0x10] sm:$0xff] %v222_v31  ;;  %v100_v53 = vmul.f32 %v380_v1, %v29_v41 }
  0x12   :  { %287 = vst [vmem:[%s899_s3 + $0x18] sm:$0xff] %v223_v32  ;;  %288 = vst [vmem:[%s899_s3 + $0x20] sm:$0xff] %v224_v37 }
  0x13   :  { %289 = vst [vmem:[%s899_s3 + $0x28] sm:$0xff] %v225_v38  ;;  %290 = vst [vmem:[%s899_s3 + $0x30] sm:$0xff] %v226_v39  ;;  %v171_v3 = vadd.f32 %v385_v2, %v100_v53 }
  0x14   :  { %291 = vst [vmem:[%s899_s3 + $0x38] sm:$0xff] %v227_v42 }
  0x15   :  { %v235_v12 = vmax.f32 %v171_v3, 0.0 }
  0x1b   :  { %v30_v54 = vld [vmem:[%s896_s0 + $0x80] sm:$0xff]  ;;  %v31_v59 = vld [vmem:[%s896_s0 + $0x88] sm:$0xff]  ;;  %v32_v60 = vld [vmem:[%s896_s0 + $0x90] sm:$0xff] }
  0x1c   :  { %v33_v61 = vld [vmem:[%s896_s0 + $0x98] sm:$0xff]  ;;  %v34_v4 = vld [vmem:[%s896_s0 + $0xa0] sm:$0xff]  ;;  %v35_v5 = vld [vmem:[%s896_s0 + $0xa8] sm:$0xff]  ;;  %v101_v10 = vmul.f32 %v380_v1, %v30_v54  ;;  %v102_v13 = vmul.f32 %v380_v1, %v31_v59  ;;  %v103_v14 = vmul.f32 %v380_v1, %v32_v60 }
  0x1d   :  { %v36_v6 = vld [vmem:[%s896_s0 + $0xb0] sm:$0xff]  ;;  %v104_v15 = vmul.f32 %v380_v1, %v33_v61  ;;  %v105_v17 = vmul.f32 %v380_v1, %v34_v4  ;;  %v106_v18 = vmul.f32 %v380_v1, %v35_v5 }
  0x1e   :  { %292 = vst [vmem:[%s899_s3 + $0x40] sm:$0xff] %v228_v55  ;;  %v172_v16 = vadd.f32 %v385_v2, %v101_v10  ;;  %v107_v19 = vmul.f32 %v380_v1, %v36_v6  ;;  %v173_v20 = vadd.f32 %v385_v2, %v102_v13  ;;  %v174_v21 = vadd.f32 %v385_v2, %v103_v14 }
  0x1f   :  { %v175_v22 = vadd.f32 %v385_v2, %v104_v15  ;;  %v176_v26 = vadd.f32 %v385_v2, %v105_v17  ;;  %v177_v27 = vadd.f32 %v385_v2, %v106_v18 }
  0x20   :  { %v236_v25 = vmax.f32 %v172_v16, 0.0  ;;  %v178_v28 = vadd.f32 %v385_v2, %v107_v19  ;;  %v237_v32 = vmax.f32 %v173_v20, 0.0  ;;  %v238_v33 = vmax.f32 %v174_v21, 0.0 }
  0x21   :  { %v239_v34 = vmax.f32 %v175_v22, 0.0  ;;  %v240_v39 = vmax.f32 %v176_v26, 0.0  ;;  %v241_v40 = vmax.f32 %v177_v27, 0.0 }
  0x22   :  { %v242_v41 = vmax.f32 %v178_v28, 0.0 }
  0x25   :  { %v37_v11 = vld [vmem:[%s896_s0 + $0xb8] sm:$0xff] }
  0x26   :  { %293 = vst [vmem:[%s899_s3 + $0x48] sm:$0xff] %v229_v62  ;;  %294 = vst [vmem:[%s899_s3 + $0x50] sm:$0xff] %v230_v63  ;;  %v108_v23 = vmul.f32 %v380_v1, %v37_v11 }
  0x27   :  { %295 = vst [vmem:[%s899_s3 + $0x58] sm:$0xff] %v231_v0  ;;  %296 = vst [vmem:[%s899_s3 + $0x60] sm:$0xff] %v232_v7 }
  0x28   :  { %297 = vst [vmem:[%s899_s3 + $0x68] sm:$0xff] %v233_v8  ;;  %298 = vst [vmem:[%s899_s3 + $0x70] sm:$0xff] %v234_v9  ;;  %v179_v35 = vadd.f32 %v385_v2, %v108_v23 }
  0x29   :  { %299 = vst [vmem:[%s899_s3 + $0x78] sm:$0xff] %v235_v12 }
  0x2a   :  { %v243_v44 = vmax.f32 %v179_v35, 0.0 }
  0x30   :  { %v38_v24 = vld [vmem:[%s896_s0 + $0xc0] sm:$0xff]  ;;  %v39_v29 = vld [vmem:[%s896_s0 + $0xc8] sm:$0xff]  ;;  %v40_v30 = vld [vmem:[%s896_s0 + $0xd0] sm:$0xff] }
  0x31   :  { %v41_v31 = vld [vmem:[%s896_s0 + $0xd8] sm:$0xff]  ;;  %v42_v36 = vld [vmem:[%s896_s0 + $0xe0] sm:$0xff]  ;;  %v43_v37 = vld [vmem:[%s896_s0 + $0xe8] sm:$0xff]  ;;  %v109_v42 = vmul.f32 %v380_v1, %v38_v24  ;;  %v110_v45 = vmul.f32 %v380_v1, %v39_v29  ;;  %v111_v46 = vmul.f32 %v380_v1, %v40_v30 }
  0x32   :  { %v44_v38 = vld [vmem:[%s896_s0 + $0xf0] sm:$0xff]  ;;  %v112_v47 = vmul.f32 %v380_v1, %v41_v31  ;;  %v113_v49 = vmul.f32 %v380_v1, %v42_v36  ;;  %v114_v50 = vmul.f32 %v380_v1, %v43_v37 }
  0x33   :  { %300 = vst [vmem:[%s899_s3 + $0x80] sm:$0xff] %v236_v25  ;;  %v180_v48 = vadd.f32 %v385_v2, %v109_v42  ;;  %v115_v51 = vmul.f32 %v380_v1, %v44_v38  ;;  %v181_v52 = vadd.f32 %v385_v2, %v110_v45  ;;  %v182_v53 = vadd.f32 %v385_v2, %v111_v46 }
  0x34   :  { %v183_v54 = vadd.f32 %v385_v2, %v112_v47  ;;  %v184_v58 = vadd.f32 %v385_v2, %v113_v49  ;;  %v185_v59 = vadd.f32 %v385_v2, %v114_v50 }
  0x35   :  { %v244_v57 = vmax.f32 %v180_v48, 0.0  ;;  %v186_v60 = vadd.f32 %v385_v2, %v115_v51  ;;  %v245_v0 = vmax.f32 %v181_v52, 0.0  ;;  %v246_v3 = vmax.f32 %v182_v53, 0.0 }
  0x36   :  { %v247_v4 = vmax.f32 %v183_v54, 0.0  ;;  %v248_v9 = vmax.f32 %v184_v58, 0.0  ;;  %v249_v10 = vmax.f32 %v185_v59, 0.0 }
  0x37   :  { %v250_v11 = vmax.f32 %v186_v60, 0.0 }
  0x3a   :  { %v45_v43 = vld [vmem:[%s896_s0 + $0xf8] sm:$0xff] }
  0x3b   :  { %301 = vst [vmem:[%s899_s3 + $0x88] sm:$0xff] %v237_v32  ;;  %302 = vst [vmem:[%s899_s3 + $0x90] sm:$0xff] %v238_v33  ;;  %v116_v55 = vmul.f32 %v380_v1, %v45_v43 }
  0x3c   :  { %303 = vst [vmem:[%s899_s3 + $0x98] sm:$0xff] %v239_v34  ;;  %304 = vst [vmem:[%s899_s3 + $0xa0] sm:$0xff] %v240_v39 }
  0x3d   :  { %305 = vst [vmem:[%s899_s3 + $0xa8] sm:$0xff] %v241_v40  ;;  %306 = vst [vmem:[%s899_s3 + $0xb0] sm:$0xff] %v242_v41  ;;  %v187_v5 = vadd.f32 %v385_v2, %v116_v55 }
  0x3e   :  { %307 = vst [vmem:[%s899_s3 + $0xb8] sm:$0xff] %v243_v44 }
  0x3f   :  { %v251_v14 = vmax.f32 %v187_v5, 0.0 }
  0x45   :  { %v46_v56 = vld [vmem:[%s896_s0 + $0x100] sm:$0xff]  ;;  %v47_v61 = vld [vmem:[%s896_s0 + $0x108] sm:$0xff]  ;;  %v48_v62 = vld [vmem:[%s896_s0 + $0x110] sm:$0xff] }
  0x46   :  { %v49_v63 = vld [vmem:[%s896_s0 + $0x118] sm:$0xff]  ;;  %v50_v6 = vld [vmem:[%s896_s0 + $0x120] sm:$0xff]  ;;  %v51_v7 = vld [vmem:[%s896_s0 + $0x128] sm:$0xff]  ;;  %v117_v12 = vmul.f32 %v380_v1, %v46_v56  ;;  %v118_v15 = vmul.f32 %v380_v1, %v47_v61  ;;  %v119_v16 = vmul.f32 %v380_v1, %v48_v62 }
  0x47   :  { %v52_v8 = vld [vmem:[%s896_s0 + $0x130] sm:$0xff]  ;;  %v120_v17 = vmul.f32 %v380_v1, %v49_v63  ;;  %v121_v19 = vmul.f32 %v380_v1, %v50_v6  ;;  %v122_v20 = vmul.f32 %v380_v1, %v51_v7 }
  0x48   :  { %308 = vst [vmem:[%s899_s3 + $0xc0] sm:$0xff] %v244_v57  ;;  %v188_v18 = vadd.f32 %v385_v2, %v117_v12  ;;  %v123_v21 = vmul.f32 %v380_v1, %v52_v8  ;;  %v189_v22 = vadd.f32 %v385_v2, %v118_v15  ;;  %v190_v23 = vadd.f32 %v385_v2, %v119_v16 }
  0x49   :  { %v191_v24 = vadd.f32 %v385_v2, %v120_v17  ;;  %v192_v28 = vadd.f32 %v385_v2, %v121_v19  ;;  %v193_v29 = vadd.f32 %v385_v2, %v122_v20 }
  0x4a   :  { %v252_v27 = vmax.f32 %v188_v18, 0.0  ;;  %v194_v30 = vadd.f32 %v385_v2, %v123_v21  ;;  %v253_v34 = vmax.f32 %v189_v22, 0.0  ;;  %v254_v35 = vmax.f32 %v190_v23, 0.0 }
  0x4b   :  { %v255_v36 = vmax.f32 %v191_v24, 0.0  ;;  %v256_v41 = vmax.f32 %v192_v28, 0.0  ;;  %v257_v42 = vmax.f32 %v193_v29, 0.0 }
  0x4c   :  { %v258_v43 = vmax.f32 %v194_v30, 0.0 }
  0x4f   :  { %v53_v13 = vld [vmem:[%s896_s0 + $0x138] sm:$0xff] }
  0x50   :  { %309 = vst [vmem:[%s899_s3 + $0xc8] sm:$0xff] %v245_v0  ;;  %310 = vst [vmem:[%s899_s3 + $0xd0] sm:$0xff] %v246_v3  ;;  %v124_v25 = vmul.f32 %v380_v1, %v53_v13 }
  0x51   :  { %311 = vst [vmem:[%s899_s3 + $0xd8] sm:$0xff] %v247_v4  ;;  %312 = vst [vmem:[%s899_s3 + $0xe0] sm:$0xff] %v248_v9 }
  0x52   :  { %313 = vst [vmem:[%s899_s3 + $0xe8] sm:$0xff] %v249_v10  ;;  %314 = vst [vmem:[%s899_s3 + $0xf0] sm:$0xff] %v250_v11  ;;  %v195_v37 = vadd.f32 %v385_v2, %v124_v25 }
  0x53   :  { %315 = vst [vmem:[%s899_s3 + $0xf8] sm:$0xff] %v251_v14 }
  0x54   :  { %v259_v46 = vmax.f32 %v195_v37, 0.0 }
  0x5a   :  { %v54_v26 = vld [vmem:[%s896_s0 + $0x140] sm:$0xff]  ;;  %v55_v31 = vld [vmem:[%s896_s0 + $0x148] sm:$0xff]  ;;  %v56_v32 = vld [vmem:[%s896_s0 + $0x150] sm:$0xff] }
  0x5b   :  { %v57_v33 = vld [vmem:[%s896_s0 + $0x158] sm:$0xff]  ;;  %v58_v38 = vld [vmem:[%s896_s0 + $0x160] sm:$0xff]  ;;  %v59_v39 = vld [vmem:[%s896_s0 + $0x168] sm:$0xff]  ;;  %v125_v44 = vmul.f32 %v380_v1, %v54_v26  ;;  %v126_v47 = vmul.f32 %v380_v1, %v55_v31  ;;  %v127_v48 = vmul.f32 %v380_v1, %v56_v32 }
  0x5c   :  { %v60_v40 = vld [vmem:[%s896_s0 + $0x170] sm:$0xff]  ;;  %v128_v49 = vmul.f32 %v380_v1, %v57_v33  ;;  %v129_v51 = vmul.f32 %v380_v1, %v58_v38  ;;  %v130_v52 = vmul.f32 %v380_v1, %v59_v39 }
  0x5d   :  { %316 = vst [vmem:[%s899_s3 + $0x100] sm:$0xff] %v252_v27  ;;  %v196_v50 = vadd.f32 %v385_v2, %v125_v44  ;;  %v131_v53 = vmul.f32 %v380_v1, %v60_v40  ;;  %v197_v54 = vadd.f32 %v385_v2, %v126_v47  ;;  %v198_v55 = vadd.f32 %v385_v2, %v127_v48 }
  0x5e   :  { %v199_v56 = vadd.f32 %v385_v2, %v128_v49  ;;  %v200_v60 = vadd.f32 %v385_v2, %v129_v51  ;;  %v201_v61 = vadd.f32 %v385_v2, %v130_v52 }
  0x5f   :  { %v260_v59 = vmax.f32 %v196_v50, 0.0  ;;  %v202_v62 = vadd.f32 %v385_v2, %v131_v53  ;;  %v261_v4 = vmax.f32 %v197_v54, 0.0  ;;  %v262_v5 = vmax.f32 %v198_v55, 0.0 }
  0x60   :  { %v263_v6 = vmax.f32 %v199_v56, 0.0  ;;  %v264_v11 = vmax.f32 %v200_v60, 0.0  ;;  %v265_v12 = vmax.f32 %v201_v61, 0.0 }
  0x61   :  { %v266_v13 = vmax.f32 %v202_v62, 0.0 }
  0x64   :  { %v61_v45 = vld [vmem:[%s896_s0 + $0x178] sm:$0xff] }
  0x65   :  { %317 = vst [vmem:[%s899_s3 + $0x108] sm:$0xff] %v253_v34  ;;  %318 = vst [vmem:[%s899_s3 + $0x110] sm:$0xff] %v254_v35  ;;  %v132_v57 = vmul.f32 %v380_v1, %v61_v45 }
  0x66   :  { %319 = vst [vmem:[%s899_s3 + $0x118] sm:$0xff] %v255_v36  ;;  %320 = vst [vmem:[%s899_s3 + $0x120] sm:$0xff] %v256_v41 }
  0x67   :  { %321 = vst [vmem:[%s899_s3 + $0x128] sm:$0xff] %v257_v42  ;;  %322 = vst [vmem:[%s899_s3 + $0x130] sm:$0xff] %v258_v43  ;;  %v203_v7 = vadd.f32 %v385_v2, %v132_v57 }
  0x68   :  { %323 = vst [vmem:[%s899_s3 + $0x138] sm:$0xff] %v259_v46 }
  0x69   :  { %v267_v16 = vmax.f32 %v203_v7, 0.0 }
  0x6f   :  { %v62_v58 = vld [vmem:[%s896_s0 + $0x180] sm:$0xff]  ;;  %v63_v63 = vld [vmem:[%s896_s0 + $0x188] sm:$0xff]  ;;  %v64_v0 = vld [vmem:[%s896_s0 + $0x190] sm:$0xff] }
  0x70   :  { %v65_v3 = vld [vmem:[%s896_s0 + $0x198] sm:$0xff]  ;;  %v66_v8 = vld [vmem:[%s896_s0 + $0x1a0] sm:$0xff]  ;;  %v67_v9 = vld [vmem:[%s896_s0 + $0x1a8] sm:$0xff]  ;;  %v133_v14 = vmul.f32 %v380_v1, %v62_v58  ;;  %v134_v17 = vmul.f32 %v380_v1, %v63_v63  ;;  %v135_v18 = vmul.f32 %v380_v1, %v64_v0 }
  0x71   :  { %v68_v10 = vld [vmem:[%s896_s0 + $0x1b0] sm:$0xff]  ;;  %v136_v19 = vmul.f32 %v380_v1, %v65_v3  ;;  %v137_v21 = vmul.f32 %v380_v1, %v66_v8  ;;  %v138_v22 = vmul.f32 %v380_v1, %v67_v9 }
  0x72   :  { %324 = vst [vmem:[%s899_s3 + $0x140] sm:$0xff] %v260_v59  ;;  %v204_v20 = vadd.f32 %v385_v2, %v133_v14  ;;  %v139_v23 = vmul.f32 %v380_v1, %v68_v10  ;;  %v205_v24 = vadd.f32 %v385_v2, %v134_v17  ;;  %v206_v25 = vadd.f32 %v385_v2, %v135_v18 }
  0x73   :  { %v207_v26 = vadd.f32 %v385_v2, %v136_v19  ;;  %v208_v30 = vadd.f32 %v385_v2, %v137_v21  ;;  %v209_v31 = vadd.f32 %v385_v2, %v138_v22 }
  0x74   :  { %v268_v29 = vmax.f32 %v204_v20, 0.0  ;;  %v210_v32 = vadd.f32 %v385_v2, %v139_v23  ;;  %v269_v36 = vmax.f32 %v205_v24, 0.0  ;;  %v270_v37 = vmax.f32 %v206_v25, 0.0 }
  0x75   :  { %v271_v38 = vmax.f32 %v207_v26, 0.0  ;;  %v272_v43 = vmax.f32 %v208_v30, 0.0  ;;  %v273_v44 = vmax.f32 %v209_v31, 0.0 }
  0x76   :  { %v274_v45 = vmax.f32 %v210_v32, 0.0 }
  0x79   :  { %v69_v15 = vld [vmem:[%s896_s0 + $0x1b8] sm:$0xff] }
  0x7a   :  { %325 = vst [vmem:[%s899_s3 + $0x148] sm:$0xff] %v261_v4  ;;  %326 = vst [vmem:[%s899_s3 + $0x150] sm:$0xff] %v262_v5  ;;  %v140_v27 = vmul.f32 %v380_v1, %v69_v15 }
  0x7b   :  { %327 = vst [vmem:[%s899_s3 + $0x158] sm:$0xff] %v263_v6  ;;  %328 = vst [vmem:[%s899_s3 + $0x160] sm:$0xff] %v264_v11 }
  0x7c   :  { %329 = vst [vmem:[%s899_s3 + $0x168] sm:$0xff] %v265_v12  ;;  %330 = vst [vmem:[%s899_s3 + $0x170] sm:$0xff] %v266_v13  ;;  %v211_v39 = vadd.f32 %v385_v2, %v140_v27 }
  0x7d   :  { %331 = vst [vmem:[%s899_s3 + $0x178] sm:$0xff] %v267_v16 }
  0x7e   :  { %v275_v48 = vmax.f32 %v211_v39, 0.0 }
  0x84   :  { %v70_v28 = vld [vmem:[%s896_s0 + $0x1c0] sm:$0xff]  ;;  %v71_v33 = vld [vmem:[%s896_s0 + $0x1c8] sm:$0xff]  ;;  %v72_v34 = vld [vmem:[%s896_s0 + $0x1d0] sm:$0xff] }
  0x85   :  { %v73_v35 = vld [vmem:[%s896_s0 + $0x1d8] sm:$0xff]  ;;  %v74_v40 = vld [vmem:[%s896_s0 + $0x1e0] sm:$0xff]  ;;  %v75_v41 = vld [vmem:[%s896_s0 + $0x1e8] sm:$0xff]  ;;  %v141_v46 = vmul.f32 %v380_v1, %v70_v28  ;;  %v142_v49 = vmul.f32 %v380_v1, %v71_v33  ;;  %v143_v50 = vmul.f32 %v380_v1, %v72_v34 }
  0x86   :  { %v76_v42 = vld [vmem:[%s896_s0 + $0x1f0] sm:$0xff]  ;;  %v144_v51 = vmul.f32 %v380_v1, %v73_v35  ;;  %v145_v53 = vmul.f32 %v380_v1, %v74_v40  ;;  %v146_v54 = vmul.f32 %v380_v1, %v75_v41 }
  0x87   :  { %332 = vst [vmem:[%s899_s3 + $0x180] sm:$0xff] %v268_v29  ;;  %v212_v52 = vadd.f32 %v385_v2, %v141_v46  ;;  %v147_v55 = vmul.f32 %v380_v1, %v76_v42  ;;  %v213_v56 = vadd.f32 %v385_v2, %v142_v49  ;;  %v214_v57 = vadd.f32 %v385_v2, %v143_v50 }
  0x88   :  { %v215_v58 = vadd.f32 %v385_v2, %v144_v51  ;;  %v216_v61 = vadd.f32 %v385_v2, %v145_v53  ;;  %v217_v62 = vadd.f32 %v385_v2, %v146_v54 }
  0x89   :  { %v276_v60 = vmax.f32 %v212_v52, 0.0  ;;  %v218_v63 = vadd.f32 %v385_v2, %v147_v55  ;;  %v277_v0 = vmax.f32 %v213_v56, 0.0  ;;  %v278_v3 = vmax.f32 %v214_v57, 0.0 }
  0x8a   :  { %v279_v4 = vmax.f32 %v215_v58, 0.0  ;;  %v280_v6 = vmax.f32 %v216_v61, 0.0  ;;  %v281_v7 = vmax.f32 %v217_v62, 0.0 }
  0x8b   :  { %v282_v8 = vmax.f32 %v218_v63, 0.0 }
  0x8e   :  { %v77_v47 = vld [vmem:[%s896_s0 + $0x1f8] sm:$0xff] }
  0x8f   :  { %333 = vst [vmem:[%s899_s3 + $0x188] sm:$0xff] %v269_v36  ;;  %334 = vst [vmem:[%s899_s3 + $0x190] sm:$0xff] %v270_v37  ;;  %v148_v59 = vmul.f32 %v380_v1, %v77_v47 }
  0x90   :  { %335 = vst [vmem:[%s899_s3 + $0x198] sm:$0xff] %v271_v38  ;;  %336 = vst [vmem:[%s899_s3 + $0x1a0] sm:$0xff] %v272_v43 }
  0x91   :  { %337 = vst [vmem:[%s899_s3 + $0x1a8] sm:$0xff] %v273_v44  ;;  %338 = vst [vmem:[%s899_s3 + $0x1b0] sm:$0xff] %v274_v45  ;;  %v219_v5 = vadd.f32 %v385_v2, %v148_v59 }
  0x92   :  { %339 = vst [vmem:[%s899_s3 + $0x1b8] sm:$0xff] %v275_v48  ;;  %340 = vst [vmem:[%s899_s3 + $0x1c0] sm:$0xff] %v276_v60 }
  0x93   :  { %341 = vst [vmem:[%s899_s3 + $0x1c8] sm:$0xff] %v277_v0  ;;  %342 = vst [vmem:[%s899_s3 + $0x1d0] sm:$0xff] %v278_v3  ;;  %v283_v1 = vmax.f32 %v219_v5, 0.0 }
  0x94   :  { %343 = vst [vmem:[%s899_s3 + $0x1d8] sm:$0xff] %v279_v4  ;;  %344 = vst [vmem:[%s899_s3 + $0x1e0] sm:$0xff] %v280_v6 }
  0x95   :  { %345 = vst [vmem:[%s899_s3 + $0x1e8] sm:$0xff] %v281_v7  ;;  %346 = vst [vmem:[%s899_s3 + $0x1f0] sm:$0xff] %v282_v8 }
  0x96   :  { %347 = vst [vmem:[%s899_s3 + $0x1f8] sm:$0xff] %v283_v1 }

// kernel: conv_block_forward.2
= control target key start
LH: loop header
LB: loop body
LE: loop exit
PB: predicated region body
PF: predicated region fallthrough
CT: control target
= control target key end

     0   :  { %vm362_vm0 = vcmask 1041408   ;;  %vm265_vm1 = vcmask 293888   ;;  %v1155_v37 = vmov 0.0   ;;  %s1720_s1 = inlined_call_operand.vmem [shape: bf16[1,36,128], index: 1, kind: input, shape index: {}]   ;;  %s1721_s0 = inlined_call_operand.vmem [shape: bf16[1,512,36], index: 0, kind: input, shape index: {}]   ;;  %s1722_s2 = inlined_call_operand.vmem [shape: f32[1,512,128], index: 2, kind: output, shape index: {0}]   ;;  %s1723_s3 = inlined_call_operand.vmem [shape: f32[1,1,128], index: 3, kind: output, shape index: {1}]   ;;  %s1724_s4 = inlined_call_operand.vmem [shape: f32[1,1,128], index: 4, kind: output, shape index: {2}]  }
   0x1   :  { %v1120_v0 = vld [vmem:[%s1720_s1 + $0x10] ss:$0 sps:$4 sm:$0x33]   ;;  %v1121_v1 = vld [vmem:[%s1720_s1 + $0x8] sm:$0xff]   ;;  %v1123_v3 = vld [vmem:[%s1721_s0] sm:$0xff]   ;;  %19 = vst [vmem:[%s1723_s3] sm:$0x1] %v1155_v37 }
   0x2   :  { %1117 = vmatprep.subr.msk.bf16.mxu0 %vm362_vm0, %v1120_v0  ;;  %v364_v2 = vsel %vm362_vm0, %v1120_v0, 0  ;;  %1118 = vmatprep.subr.msk.bf16.mxu1 %vm362_vm0, %v1120_v0  ;;  %v1122_v4 = vld [vmem:[%s1720_s1] sm:$0xff]   ;;  %v1124_v5 = vld [vmem:[%s1721_s0 + $0x8] sm:$0xff]   ;;  %v1125_v6 = vld [vmem:[%s1721_s0 + $0x10] sm:$0xff]   ;;  %20 = vst [vmem:[%s1724_s4] sm:$0x1] %v1155_v37 }
   0x3   :  { %1042 = vmatpush3.bf16.msra.mxu0 %v364_v2  ;;  %1114 = vmatpush3.bf16.msra.mxu1 %v364_v2  ;;  %v1126_v7 = vld [vmem:[%s1721_s0 + $0x18] sm:$0xff]   ;;  %v1127_v8 = vld [vmem:[%s1721_s0 + $0x20] sm:$0xff]   ;;  %v1140_v10 = vld [vmem:[%s1721_s0 + $0x88] sm:$0xff]  }
   0x4   :  { %1043 = vmatprep.subr.bf16.mxu0 %v1121_v1  ;;  %1112 = vmatprep.subr.bf16.mxu1 %v1121_v1  ;;  %v1139_v9 = vld [vmem:[%s1721_s0 + $0x80] sm:$0xff]   ;;  %v1141_v11 = vld [vmem:[%s1721_s0 + $0x90] sm:$0xff]   ;;  %v1128_v12 = vld [vmem:[%s1721_s0 + $0x28] sm:$0xff]  }
   0x5   :  { %1047 = vmatprep.mubr.msk.bf16.mxu0 %vm265_vm1, %v1123_v3  ;;  %1079 = vmatprep.mubr.msk.bf16.mxu1 %vm265_vm1, %v1139_v9  ;;  %v1129_v13 = vld [vmem:[%s1721_s0 + $0x30] sm:$0xff]   ;;  %v1142_v14 = vld [vmem:[%s1721_s0 + $0x98] sm:$0xff]   ;;  %v1143_v15 = vld [vmem:[%s1721_s0 + $0xa0] sm:$0xff]  }
   0x6   :  { %v1130_v16 = vld [vmem:[%s1721_s0 + $0x38] sm:$0xff]   ;;  %v1144_v17 = vld [vmem:[%s1721_s0 + $0xa8] sm:$0xff]   ;;  %v1131_v18 = vld [vmem:[%s1721_s0 + $0x40] sm:$0xff]  }
   0x7   :  { %1044 = vmatpush3.bf16.msra.mxu0 %v1121_v1  ;;  %1115 = vmatpush3.bf16.msra.mxu1 %v1121_v1  ;;  %v1145_v19 = vld [vmem:[%s1721_s0 + $0xb0] sm:$0xff]   ;;  %v1132_v20 = vld [vmem:[%s1721_s0 + $0x48] sm:$0xff]   ;;  %v1146_v21 = vld [vmem:[%s1721_s0 + $0xb8] sm:$0xff]  }
   0x8   :  { %1045 = vmatprep.subr.bf16.mxu0 %v1122_v4  ;;  %1113 = vmatprep.subr.bf16.mxu1 %v1122_v4  ;;  %v1133_v22 = vld [vmem:[%s1721_s0 + $0x50] sm:$0xff]   ;;  %v1147_v23 = vld [vmem:[%s1721_s0 + $0xc0] sm:$0xff]   ;;  %v1134_v24 = vld [vmem:[%s1721_s0 + $0x58] sm:$0xff]  }
   0x9   :  { %v1148_v25 = vld [vmem:[%s1721_s0 + $0xc8] sm:$0xff]   ;;  %v1135_v26 = vld [vmem:[%s1721_s0 + $0x60] sm:$0xff]   ;;  %v1149_v27 = vld [vmem:[%s1721_s0 + $0xd0] sm:$0xff]  }
   0xa   :  { %v1136_v28 = vld [vmem:[%s1721_s0 + $0x68] sm:$0xff]   ;;  %v1150_v29 = vld [vmem:[%s1721_s0 + $0xd8] sm:$0xff]   ;;  %v1137_v30 = vld [vmem:[%s1721_s0 + $0x70] sm:$0xff]  }
   0xb   :  { %1046 = vmatpush3.bf16.msra.mxu0 %v1122_v4  ;;  %1116 = vmatpush3.bf16.msra.mxu1 %v1122_v4  ;;  %v1151_v31 = vld [vmem:[%s1721_s0 + $0xe0] sm:$0xff]   ;;  %v1138_v32 = vld [vmem:[%s1721_s0 + $0x78] sm:$0xff]   ;;  %v1152_v33 = vld [vmem:[%s1721_s0 + $0xe8] sm:$0xff]  }
   0xc   :  { %v1153_v34 = vld [vmem:[%s1721_s0 + $0xf0] sm:$0xff]   ;;  %v1154_v35 = vld [vmem:[%s1721_s0 + $0xf8] sm:$0xff]  }
   0xe   :  { %1048 = vmatmul.mubr.msk.bf16.vlgmr.msra.gmra.mxu0 %vm265_vm1, %v1124_v5  ;;  %1080 = vmatmul.mubr.msk.bf16.vlgmr.msra.gmra.mxu1 %vm265_vm1, %v1140_v10 }
   0xf   :  { %1051 = vmatprep.mubr.msk.bf16.mxu0 %vm265_vm1, %v1125_v6  ;;  %1083 = vmatprep.mubr.msk.bf16.mxu1 %vm265_vm1, %v1141_v11 }
  0x16   :  { %1052 = vmatmul.mubr.msk.bf16.gmra.mxu0 %vm265_vm1, %v1126_v7  ;;  %1084 = vmatmul.mubr.msk.bf16.gmra.mxu1 %vm265_vm1, %v1142_v14 }
  0x17   :  { %1055 = vmatprep.mubr.msk.bf16.mxu0 %vm265_vm1, %v1127_v8  ;;  %1087 = vmatprep.mubr.msk.bf16.mxu1 %vm265_vm1, %v1143_v15 }
  0x1e   :  { %1056 = vmatmul.mubr.msk.bf16.gmra.mxu0 %vm265_vm1, %v1128_v12  ;;  %1088 = vmatmul.mubr.msk.bf16.gmra.mxu1 %vm265_vm1, %v1144_v17 }
  0x1f   :  { %1059 = vmatprep.mubr.msk.bf16.mxu0 %vm265_vm1, %v1129_v13  ;;  %1091 = vmatprep.mubr.msk.bf16.mxu1 %vm265_vm1, %v1145_v19 }
  0x26   :  { %1060 = vmatmul.mubr.msk.bf16.gmra.mxu0 %vm265_vm1, %v1130_v16  ;;  %1092 = vmatmul.mubr.msk.bf16.gmra.mxu1 %vm265_vm1, %v1146_v21 }
  0x27   :  { %1063 = vmatprep.mubr.msk.bf16.mxu0 %vm265_vm1, %v1131_v18  ;;  %1095 = vmatprep.mubr.msk.bf16.mxu1 %vm265_vm1, %v1147_v23 }
  0x2e   :  { %1064 = vmatmul.mubr.msk.bf16.gmra.mxu0 %vm265_vm1, %v1132_v20  ;;  %1096 = vmatmul.mubr.msk.bf16.gmra.mxu1 %vm265_vm1, %v1148_v25 }
  0x2f   :  { %1067 = vmatprep.mubr.msk.bf16.mxu0 %vm265_vm1, %v1133_v22  ;;  %1099 = vmatprep.mubr.msk.bf16.mxu1 %vm265_vm1, %v1149_v27 }
  0x36   :  { %1068 = vmatmul.mubr.msk.bf16.gmra.mxu0 %vm265_vm1, %v1134_v24  ;;  %1100 = vmatmul.mubr.msk.bf16.gmra.mxu1 %vm265_vm1, %v1150_v29 }
  0x37   :  { %1071 = vmatprep.mubr.msk.bf16.mxu0 %vm265_vm1, %v1135_v26  ;;  %1103 = vmatprep.mubr.msk.bf16.mxu1 %vm265_vm1, %v1151_v31 }
  0x3e   :  { %1072 = vmatmul.mubr.msk.bf16.gmra.mxu0 %vm265_vm1, %v1136_v28  ;;  %1104 = vmatmul.mubr.msk.bf16.gmra.mxu1 %vm265_vm1, %v1152_v33 }
  0x3f   :  { %1075 = vmatprep.mubr.msk.bf16.mxu0 %vm265_vm1, %v1137_v30  ;;  %1107 = vmatprep.mubr.msk.bf16.mxu1 %vm265_vm1, %v1153_v34 }
  0x46   :  { %1076 = vmatmul.mubr.msk.bf16.gmra.mxu0 %vm265_vm1, %v1138_v32  ;;  %1108 = vmatmul.mubr.msk.bf16.gmra.mxu1 %vm265_vm1, %v1154_v35 }
  0xce   :  { %v1049_v36 = vpop.f32.mrf.mxu0  ;;  %v1336_v45 = vpop.f32.mrf.mxu1 }
  0xcf   :  { %657 = vst [vmem:[%s1722_s2 + $0x10] sm:$0xff] %v1049_v36  ;;  %v794_v46 = vmul.f32 %v1049_v36, %v1049_v36  ;;  %689 = vst [vmem:[%s1722_s2 + $0x110] sm:$0xff] %v1336_v45 }
  0xd0   :  { %v400_v38 = vpop.f32.mrf.mxu0  ;;  %v1345_v50 = vpop.f32.mrf.mxu1 }
  0xd1   :  { %655 = vst [vmem:[%s1722_s2] sm:$0xff] %v400_v38  ;;  %v792_v41 = vmul.f32 %v400_v38, %v400_v38  ;;  %687 = vst [vmem:[%s1722_s2 + $0x100] sm:$0xff] %v1345_v50 }
  0xd2   :  { %v1050_v39 = vpop.f32.mrf.mxu0  ;;  %v1354_v55 = vpop.f32.mrf.mxu1 }
  0xd3   :  { %658 = vst [vmem:[%s1722_s2 + $0x18] sm:$0xff] %v1050_v39  ;;  %v795_v51 = vmul.f32 %v1050_v39, %v1050_v39  ;;  %690 = vst [vmem:[%s1722_s2 + $0x118] sm:$0xff] %v1354_v55 }
  0xd4   :  { %v403_v40 = vpop.f32.mrf.mxu0  ;;  %v1363_v60 = vpop.f32.mrf.mxu1 }
  0xd5   :  { %656 = vst [vmem:[%s1722_s2 + $0x8] sm:$0xff] %v403_v40  ;;  %v720_v42 = vadd.f32 %v403_v40, %v400_v38  ;;  %v793_v43 = vmul.f32 %v403_v40, %v403_v40  ;;  %688 = vst [vmem:[%s1722_s2 + $0x108] sm:$0xff] %v1363_v60 }
  0xd6   :  { %v1053_v44 = vpop.f32.mrf.mxu0  ;;  %v1372_v1 = vpop.f32.mrf.mxu1 }
  0xd7   :  { %v721_v47 = vadd.f32 %v1049_v36, %v720_v42  ;;  %v856_v48 = vadd.f32 %v793_v43, %v792_v41  ;;  %661 = vst [vmem:[%s1722_s2 + $0x30] sm:$0xff] %v1053_v44  ;;  %v798_v2 = vmul.f32 %v1053_v44, %v1053_v44  ;;  %693 = vst [vmem:[%s1722_s2 + $0x130] sm:$0xff] %v1372_v1 }
  0xd8   :  { %v416_v49 = vpop.f32.mrf.mxu0  ;;  %v1381_v6 = vpop.f32.mrf.mxu1 }
  0xd9   :  { %v857_v52 = vadd.f32 %v856_v48, %v794_v46  ;;  %659 = vst [vmem:[%s1722_s2 + $0x20] sm:$0xff] %v416_v49  ;;  %v722_v53 = vadd.f32 %v1050_v39, %v721_v47  ;;  %v796_v57 = vmul.f32 %v416_v49, %v416_v49  ;;  %691 = vst [vmem:[%s1722_s2 + $0x120] sm:$0xff] %v1381_v6 }
  0xda   :  { %v1054_v54 = vpop.f32.mrf.mxu0  ;;  %v1390_v11 = vpop.f32.mrf.mxu1 }
  0xdb   :  { %v723_v56 = vadd.f32 %v722_v53, %v416_v49  ;;  %v858_v58 = vadd.f32 %v857_v52, %v795_v51  ;;  %662 = vst [vmem:[%s1722_s2 + $0x38] sm:$0xff] %v1054_v54  ;;  %v799_v7 = vmul.f32 %v1054_v54, %v1054_v54  ;;  %694 = vst [vmem:[%s1722_s2 + $0x138] sm:$0xff] %v1390_v11 }
  0xdc   :  { %v419_v59 = vpop.f32.mrf.mxu0  ;;  %v1399_v16 = vpop.f32.mrf.mxu1 }
  0xdd   :  { %v859_v61 = vadd.f32 %v858_v58, %v796_v57  ;;  %660 = vst [vmem:[%s1722_s2 + $0x28] sm:$0xff] %v419_v59  ;;  %v724_v62 = vadd.f32 %v723_v56, %v419_v59  ;;  %v797_v63 = vmul.f32 %v419_v59, %v419_v59  ;;  %692 = vst [vmem:[%s1722_s2 + $0x128] sm:$0xff] %v1399_v16 }
  0xde   :  { %v1057_v0 = vpop.f32.mrf.mxu0  ;;  %v1408_v21 = vpop.f32.mrf.mxu1 }
  0xdf   :  { %v725_v3 = vadd.f32 %v1053_v44, %v724_v62  ;;  %v860_v4 = vadd.f32 %v859_v61, %v797_v63  ;;  %665 = vst [vmem:[%s1722_s2 + $0x50] sm:$0xff] %v1057_v0  ;;  %v802_v22 = vmul.f32 %v1057_v0, %v1057_v0  ;;  %697 = vst [vmem:[%s1722_s2 + $0x150] sm:$0xff] %v1408_v21 }
  0xe0   :  { %v432_v5 = vpop.f32.mrf.mxu0  ;;  %v1417_v26 = vpop.f32.mrf.mxu1 }
  0xe1   :  { %v861_v8 = vadd.f32 %v860_v4, %v798_v2  ;;  %663 = vst [vmem:[%s1722_s2 + $0x40] sm:$0xff] %v432_v5  ;;  %v726_v9 = vadd.f32 %v1054_v54, %v725_v3  ;;  %v800_v13 = vmul.f32 %v432_v5, %v432_v5  ;;  %695 = vst [vmem:[%s1722_s2 + $0x140] sm:$0xff] %v1417_v26 }
  0xe2   :  { %v1058_v10 = vpop.f32.mrf.mxu0  ;;  %v1426_v31 = vpop.f32.mrf.mxu1 }
  0xe3   :  { %v727_v12 = vadd.f32 %v726_v9, %v432_v5  ;;  %v862_v14 = vadd.f32 %v861_v8, %v799_v7  ;;  %666 = vst [vmem:[%s1722_s2 + $0x58] sm:$0xff] %v1058_v10  ;;  %v803_v27 = vmul.f32 %v1058_v10, %v1058_v10  ;;  %698 = vst [vmem:[%s1722_s2 + $0x158] sm:$0xff] %v1426_v31 }
  0xe4   :  { %v435_v15 = vpop.f32.mrf.mxu0  ;;  %v1435_v36 = vpop.f32.mrf.mxu1 }
  0xe5   :  { %v863_v17 = vadd.f32 %v862_v14, %v800_v13  ;;  %664 = vst [vmem:[%s1722_s2 + $0x48] sm:$0xff] %v435_v15  ;;  %v728_v18 = vadd.f32 %v727_v12, %v435_v15  ;;  %v801_v19 = vmul.f32 %v435_v15, %v435_v15  ;;  %696 = vst [vmem:[%s1722_s2 + $0x148] sm:$0xff] %v1435_v36 }
  0xe6   :  { %v1061_v20 = vpop.f32.mrf.mxu0  ;;  %v1444_v41 = vpop.f32.mrf.mxu1 }
  0xe7   :  { %v729_v23 = vadd.f32 %v1057_v0, %v728_v18  ;;  %v864_v24 = vadd.f32 %v863_v17, %v801_v19  ;;  %669 = vst [vmem:[%s1722_s2 + $0x70] sm:$0xff] %v1061_v20  ;;  %v806_v42 = vmul.f32 %v1061_v20, %v1061_v20  ;;  %701 = vst [vmem:[%s1722_s2 + $0x170] sm:$0xff] %v1444_v41 }
  0xe8   :  { %v448_v25 = vpop.f32.mrf.mxu0  ;;  %v1453_v47 = vpop.f32.mrf.mxu1 }
  0xe9   :  { %v865_v28 = vadd.f32 %v864_v24, %v802_v22  ;;  %667 = vst [vmem:[%s1722_s2 + $0x60] sm:$0xff] %v448_v25  ;;  %v730_v29 = vadd.f32 %v1058_v10, %v729_v23  ;;  %v804_v33 = vmul.f32 %v448_v25, %v448_v25  ;;  %699 = vst [vmem:[%s1722_s2 + $0x160] sm:$0xff] %v1453_v47 }
  0xea   :  { %v1062_v30 = vpop.f32.mrf.mxu0  ;;  %v1462_v53 = vpop.f32.mrf.mxu1 }
  0xeb   :  { %v731_v32 = vadd.f32 %v730_v29, %v448_v25  ;;  %v866_v34 = vadd.f32 %v865_v28, %v803_v27  ;;  %670 = vst [vmem:[%s1722_s2 + $0x78] sm:$0xff] %v1062_v30  ;;  %v807_v48 = vmul.f32 %v1062_v30, %v1062_v30  ;;  %702 = vst [vmem:[%s1722_s2 + $0x178] sm:$0xff] %v1462_v53 }
  0xec   :  { %v451_v35 = vpop.f32.mrf.mxu0  ;;  %v1471_v59 = vpop.f32.mrf.mxu1 }
  0xed   :  { %v867_v37 = vadd.f32 %v866_v34, %v804_v33  ;;  %668 = vst [vmem:[%s1722_s2 + $0x68] sm:$0xff] %v451_v35  ;;  %v732_v38 = vadd.f32 %v731_v32, %v451_v35  ;;  %v805_v39 = vmul.f32 %v451_v35, %v451_v35  ;;  %700 = vst [vmem:[%s1722_s2 + $0x168] sm:$0xff] %v1471_v59 }
  0xee   :  { %v1065_v40 = vpop.f32.mrf.mxu0  ;;  %v1480_v2 = vpop.f32.mrf.mxu1 }
  0xef   :  { %v733_v43 = vadd.f32 %v1061_v20, %v732_v38  ;;  %v868_v44 = vadd.f32 %v867_v37, %v805_v39  ;;  %673 = vst [vmem:[%s1722_s2 + $0x90] sm:$0xff] %v1065_v40  ;;  %v810_v3 = vmul.f32 %v1065_v40, %v1065_v40  ;;  %705 = vst [vmem:[%s1722_s2 + $0x190] sm:$0xff] %v1480_v2 }
  0xf0   :  { %v464_v46 = vpop.f32.mrf.mxu0  ;;  %v1489_v8 = vpop.f32.mrf.mxu1 }
  0xf1   :  { %v869_v49 = vadd.f32 %v868_v44, %v806_v42  ;;  %671 = vst [vmem:[%s1722_s2 + $0x80] sm:$0xff] %v464_v46  ;;  %v734_v51 = vadd.f32 %v1062_v30, %v733_v43  ;;  %v808_v56 = vmul.f32 %v464_v46, %v464_v46  ;;  %703 = vst [vmem:[%s1722_s2 + $0x180] sm:$0xff] %v1489_v8 }
  0xf2   :  { %v1066_v52 = vpop.f32.mrf.mxu0  ;;  %v1498_v14 = vpop.f32.mrf.mxu1 }
  0xf3   :  { %v735_v54 = vadd.f32 %v734_v51, %v464_v46  ;;  %v870_v57 = vadd.f32 %v869_v49, %v807_v48  ;;  %674 = vst [vmem:[%s1722_s2 + $0x98] sm:$0xff] %v1066_v52  ;;  %v811_v9 = vmul.f32 %v1066_v52, %v1066_v52  ;;  %706 = vst [vmem:[%s1722_s2 + $0x198] sm:$0xff] %v1498_v14 }
  0xf4   :  { %v467_v58 = vpop.f32.mrf.mxu0  ;;  %v1507_v20 = vpop.f32.mrf.mxu1 }
  0xf5   :  { %v871_v61 = vadd.f32 %v870_v57, %v808_v56  ;;  %672 = vst [vmem:[%s1722_s2 + $0x88] sm:$0xff] %v467_v58  ;;  %v736_v62 = vadd.f32 %v735_v54, %v467_v58  ;;  %v809_v63 = vmul.f32 %v467_v58, %v467_v58  ;;  %704 = vst [vmem:[%s1722_s2 + $0x188] sm:$0xff] %v1507_v20 }
  0xf6   :  { %v1069_v0 = vpop.f32.mrf.mxu0  ;;  %v1516_v27 = vpop.f32.mrf.mxu1 }
  0xf7   :  { %v737_v4 = vadd.f32 %v1065_v40, %v736_v62  ;;  %v872_v5 = vadd.f32 %v871_v61, %v809_v63  ;;  %677 = vst [vmem:[%s1722_s2 + $0xb0] sm:$0xff] %v1069_v0  ;;  %v814_v28 = vmul.f32 %v1069_v0, %v1069_v0  ;;  %709 = vst [vmem:[%s1722_s2 + $0x1b0] sm:$0xff] %v1516_v27 }
  0xf8   :  { %v480_v7 = vpop.f32.mrf.mxu0  ;;  %v1525_v33 = vpop.f32.mrf.mxu1 }
  0xf9   :  { %v873_v10 = vadd.f32 %v872_v5, %v810_v3  ;;  %675 = vst [vmem:[%s1722_s2 + $0xa0] sm:$0xff] %v480_v7  ;;  %v738_v12 = vadd.f32 %v1066_v52, %v737_v4  ;;  %v812_v17 = vmul.f32 %v480_v7, %v480_v7  ;;  %707 = vst [vmem:[%s1722_s2 + $0x1a0] sm:$0xff] %v1525_v33 }
  0xfa   :  { %v1070_v13 = vpop.f32.mrf.mxu0  ;;  %v1534_v39 = vpop.f32.mrf.mxu1 }
  0xfb   :  { %v739_v15 = vadd.f32 %v738_v12, %v480_v7  ;;  %v874_v18 = vadd.f32 %v873_v10, %v811_v9  ;;  %678 = vst [vmem:[%s1722_s2 + $0xb8] sm:$0xff] %v1070_v13  ;;  %v815_v34 = vmul.f32 %v1070_v13, %v1070_v13  ;;  %710 = vst [vmem:[%s1722_s2 + $0x1b8] sm:$0xff] %v1534_v39 }
  0xfc   :  { %v483_v19 = vpop.f32.mrf.mxu0  ;;  %v1543_v46 = vpop.f32.mrf.mxu1 }
  0xfd   :  { %v875_v22 = vadd.f32 %v874_v18, %v812_v17  ;;  %676 = vst [vmem:[%s1722_s2 + $0xa8] sm:$0xff] %v483_v19  ;;  %v740_v23 = vadd.f32 %v739_v15, %v483_v19  ;;  %v813_v24 = vmul.f32 %v483_v19, %v483_v19  ;;  %708 = vst [vmem:[%s1722_s2 + $0x1a8] sm:$0xff] %v1543_v46 }
  0xfe   :  { %v1073_v25 = vpop.f32.mrf.mxu0  ;;  %v1552_v54 = vpop.f32.mrf.mxu1 }
  0xff   :  { %v741_v29 = vadd.f32 %v1069_v0, %v740_v23  ;;  %v876_v30 = vadd.f32 %v875_v22, %v813_v24  ;;  %681 = vst [vmem:[%s1722_s2 + $0xd0] sm:$0xff] %v1073_v25  ;;  %v818_v56 = vmul.f32 %v1073_v25, %v1073_v25  ;;  %713 = vst [vmem:[%s1722_s2 + $0x1d0] sm:$0xff] %v1552_v54 }
 0x100   :  { %v496_v32 = vpop.f32.mrf.mxu0  ;;  %v1561_v62 = vpop.f32.mrf.mxu1 }
 0x101   :  { %v877_v35 = vadd.f32 %v876_v30, %v814_v28  ;;  %679 = vst [vmem:[%s1722_s2 + $0xc0] sm:$0xff] %v496_v32  ;;  %v742_v37 = vadd.f32 %v1070_v13, %v741_v29  ;;  %v816_v42 = vmul.f32 %v496_v32, %v496_v32  ;;  %711 = vst [vmem:[%s1722_s2 + $0x1c0] sm:$0xff] %v1561_v62 }
 0x102   :  { %v1074_v38 = vpop.f32.mrf.mxu0  ;;  %v1570_v5 = vpop.f32.mrf.mxu1 }
 0x103   :  { %v743_v40 = vadd.f32 %v742_v37, %v496_v32  ;;  %v878_v43 = vadd.f32 %v877_v35, %v815_v34  ;;  %682 = vst [vmem:[%s1722_s2 + $0xd8] sm:$0xff] %v1074_v38  ;;  %v819_v63 = vmul.f32 %v1074_v38, %v1074_v38  ;;  %714 = vst [vmem:[%s1722_s2 + $0x1d8] sm:$0xff] %v1570_v5 }
 0x104   :  { %v499_v44 = vpop.f32.mrf.mxu0  ;;  %v1579_v13 = vpop.f32.mrf.mxu1  ;;  %v824_v34 = vmul.f32 %v1345_v50, %v1345_v50 }
 0x105   :  { %v879_v48 = vadd.f32 %v878_v43, %v816_v42  ;;  %680 = vst [vmem:[%s1722_s2 + $0xc8] sm:$0xff] %v499_v44  ;;  %v744_v49 = vadd.f32 %v743_v40, %v499_v44  ;;  %v817_v51 = vmul.f32 %v499_v44, %v499_v44  ;;  %712 = vst [vmem:[%s1722_s2 + $0x1c8] sm:$0xff] %v1579_v13 }
 0x106   :  { %v1077_v52 = vpop.f32.mrf.mxu0  ;;  %v1588_v19 = vpop.f32.mrf.mxu1  ;;  %v825_v42 = vmul.f32 %v1363_v60, %v1363_v60 }
 0x107   :  { %v745_v57 = vadd.f32 %v1073_v25, %v744_v49  ;;  %v880_v58 = vadd.f32 %v879_v48, %v817_v51  ;;  %685 = vst [vmem:[%s1722_s2 + $0xf0] sm:$0xff] %v1077_v52  ;;  %v822_v22 = vmul.f32 %v1077_v52, %v1077_v52  ;;  %717 = vst [vmem:[%s1722_s2 + $0x1f0] sm:$0xff] %v1588_v19 }
 0x108   :  { %v512_v61 = vpop.f32.mrf.mxu0  ;;  %v1594_v25 = vpop.f32.mrf.mxu1  ;;  %v827_v49 = vmul.f32 %v1354_v55, %v1354_v55 }
 0x109   :  { %v881_v0 = vadd.f32 %v880_v58, %v818_v56  ;;  %683 = vst [vmem:[%s1722_s2 + $0xe0] sm:$0xff] %v512_v61  ;;  %v746_v3 = vadd.f32 %v1074_v38, %v745_v57  ;;  %v820_v9 = vmul.f32 %v512_v61, %v512_v61  ;;  %715 = vst [vmem:[%s1722_s2 + $0x1e0] sm:$0xff] %v1594_v25 }
 0x10a   :  { %v1078_v4 = vpop.f32.mrf.mxu0  ;;  %v1600_v32 = vpop.f32.mrf.mxu1  ;;  %v828_v56 = vmul.f32 %v1381_v6, %v1381_v6 }
 0x10b   :  { %v747_v7 = vadd.f32 %v746_v3, %v512_v61  ;;  %v882_v10 = vadd.f32 %v881_v0, %v819_v63  ;;  %686 = vst [vmem:[%s1722_s2 + $0xf8] sm:$0xff] %v1078_v4  ;;  %v823_v28 = vmul.f32 %v1078_v4, %v1078_v4  ;;  %718 = vst [vmem:[%s1722_s2 + $0x1f8] sm:$0xff] %v1600_v32 }
 0x10c   :  { %v515_v12 = vpop.f32.mrf.mxu0  ;;  %v1609_v38 = vpop.f32.mrf.mxu1  ;;  %v829_v63 = vmul.f32 %v1399_v16, %v1399_v16 }
 0x10d   :  { %v883_v15 = vadd.f32 %v882_v10, %v820_v9  ;;  %684 = vst [vmem:[%s1722_s2 + $0xe8] sm:$0xff] %v515_v12  ;;  %v748_v17 = vadd.f32 %v747_v7, %v515_v12  ;;  %v821_v18 = vmul.f32 %v515_v12, %v515_v12  ;;  %716 = vst [vmem:[%s1722_s2 + $0x1e8] sm:$0xff] %v1609_v38 }
 0x10e   :  { %v832_v9 = vmul.f32 %v1417_v26, %v1417_v26 }
 0x10f   :  { %v749_v23 = vadd.f32 %v1077_v52, %v748_v17  ;;  %v884_v24 = vadd.f32 %v883_v15, %v821_v18  ;;  %v833_v15 = vmul.f32 %v1435_v36, %v1435_v36 }
 0x111   :  { %v750_v29 = vadd.f32 %v1078_v4, %v749_v23  ;;  %v885_v30 = vadd.f32 %v884_v24, %v822_v22  ;;  %v836_v24 = vmul.f32 %v1453_v47, %v1453_v47 }
 0x113   :  { %v886_v35 = vadd.f32 %v885_v30, %v823_v28  ;;  %v751_v37 = vadd.f32 %v750_v29, %v1345_v50  ;;  %v826_v50 = vmul.f32 %v1336_v45, %v1336_v45  ;;  %v837_v30 = vmul.f32 %v1471_v59, %v1471_v59 }
 0x115   :  { %v752_v40 = vadd.f32 %v751_v37, %v1363_v60  ;;  %v887_v43 = vadd.f32 %v886_v35, %v824_v34 }
 0x117   :  { %v753_v44 = vadd.f32 %v1336_v45, %v752_v40  ;;  %v888_v48 = vadd.f32 %v887_v43, %v825_v42  ;;  %v830_v45 = vmul.f32 %v1372_v1, %v1372_v1  ;;  %v840_v42 = vmul.f32 %v1489_v8, %v1489_v8 }
 0x119   :  { %v889_v51 = vadd.f32 %v888_v48, %v826_v50  ;;  %v754_v52 = vadd.f32 %v1354_v55, %v753_v44  ;;  %v831_v55 = vmul.f32 %v1390_v11, %v1390_v11  ;;  %v841_v44 = vmul.f32 %v1507_v20, %v1507_v20 }
 0x11b   :  { %v755_v60 = vadd.f32 %v754_v52, %v1381_v6  ;;  %v890_v57 = vadd.f32 %v889_v51, %v827_v49 }
 0x11d   :  { %v891_v58 = vadd.f32 %v890_v57, %v828_v56  ;;  %v756_v61 = vadd.f32 %v755_v60, %v1399_v16  ;;  %v844_v60 = vmul.f32 %v1525_v33, %v1525_v33 }
 0x11f   :  { %v757_v0 = vadd.f32 %v1372_v1, %v756_v61  ;;  %v892_v3 = vadd.f32 %v891_v58, %v829_v63  ;;  %v834_v1 = vmul.f32 %v1408_v21, %v1408_v21  ;;  %v845_v58 = vmul.f32 %v1543_v46, %v1543_v46 }
 0x121   :  { %v893_v4 = vadd.f32 %v892_v3, %v830_v45  ;;  %v758_v7 = vadd.f32 %v1390_v11, %v757_v0  ;;  %v835_v11 = vmul.f32 %v1426_v31, %v1426_v31  ;;  %v848_v3 = vmul.f32 %v1561_v62, %v1561_v62 }
 0x123   :  { %v759_v6 = vadd.f32 %v758_v7, %v1417_v26  ;;  %v894_v10 = vadd.f32 %v893_v4, %v831_v55  ;;  %v849_v7 = vmul.f32 %v1579_v13, %v1579_v13 }
 0x125   :  { %v895_v12 = vadd.f32 %v894_v10, %v832_v9  ;;  %v760_v16 = vadd.f32 %v759_v6, %v1435_v36 }
 0x127   :  { %v761_v17 = vadd.f32 %v1408_v21, %v760_v16  ;;  %v896_v18 = vadd.f32 %v895_v12, %v833_v15  ;;  %v838_v21 = vmul.f32 %v1444_v41, %v1444_v41  ;;  %v852_v16 = vmul.f32 %v1594_v25, %v1594_v25 }
 0x129   :  { %v897_v22 = vadd.f32 %v896_v18, %v834_v1  ;;  %v762_v23 = vadd.f32 %v1426_v31, %v761_v17  ;;  %v839_v31 = vmul.f32 %v1462_v53, %v1462_v53  ;;  %v853_v17 = vmul.f32 %v1609_v38, %v1609_v38 }
 0x12b   :  { %v763_v26 = vadd.f32 %v762_v23, %v1453_v47  ;;  %v898_v28 = vadd.f32 %v897_v22, %v835_v11 }
 0x12d   :  { %v899_v29 = vadd.f32 %v898_v28, %v836_v24  ;;  %v764_v36 = vadd.f32 %v763_v26, %v1471_v59 }
 0x12f   :  { %v765_v34 = vadd.f32 %v1444_v41, %v764_v36  ;;  %v900_v35 = vadd.f32 %v899_v29, %v837_v30  ;;  %v842_v41 = vmul.f32 %v1480_v2, %v1480_v2 }
 0x131   :  { %v901_v37 = vadd.f32 %v900_v35, %v838_v21  ;;  %v766_v40 = vadd.f32 %v1462_v53, %v765_v34  ;;  %v843_v53 = vmul.f32 %v1498_v14, %v1498_v14 }
 0x133   :  { %v767_v47 = vadd.f32 %v766_v40, %v1489_v8  ;;  %v902_v43 = vadd.f32 %v901_v37, %v839_v31 }
 0x135   :  { %v903_v50 = vadd.f32 %v902_v43, %v840_v42  ;;  %v768_v59 = vadd.f32 %v767_v47, %v1507_v20 }
 0x137   :  { %v769_v48 = vadd.f32 %v1480_v2, %v768_v59  ;;  %v904_v49 = vadd.f32 %v903_v50, %v841_v44  ;;  %v846_v2 = vmul.f32 %v1516_v27, %v1516_v27 }
 0x139   :  { %v905_v51 = vadd.f32 %v904_v49, %v842_v41  ;;  %v770_v52 = vadd.f32 %v1498_v14, %v769_v48  ;;  %v847_v14 = vmul.f32 %v1534_v39, %v1534_v39 }
 0x13b   :  { %v771_v8 = vadd.f32 %v770_v52, %v1525_v33  ;;  %v906_v56 = vadd.f32 %v905_v51, %v843_v53 }
 0x13d   :  { %v907_v57 = vadd.f32 %v906_v56, %v844_v60  ;;  %v772_v20 = vadd.f32 %v771_v8, %v1543_v46 }
 0x13f   :  { %v773_v61 = vadd.f32 %v1516_v27, %v772_v20  ;;  %v908_v63 = vadd.f32 %v907_v57, %v845_v58  ;;  %v850_v27 = vmul.f32 %v1552_v54, %v1552_v54 }
 0x141   :  { %v909_v45 = vadd.f32 %v908_v63, %v846_v2  ;;  %v774_v0 = vadd.f32 %v1534_v39, %v773_v61  ;;  %v851_v39 = vmul.f32 %v1570_v5, %v1570_v5 }
 0x143   :  { %v775_v33 = vadd.f32 %v774_v0, %v1561_v62  ;;  %v910_v55 = vadd.f32 %v909_v45, %v847_v14 }
 0x145   :  { %v911_v4 = vadd.f32 %v910_v55, %v848_v3  ;;  %v776_v46 = vadd.f32 %v775_v33, %v1579_v13 }
 0x147   :  { %v777_v6 = vadd.f32 %v1552_v54, %v776_v46  ;;  %v912_v9 = vadd.f32 %v911_v4, %v849_v7  ;;  %v854_v54 = vmul.f32 %v1588_v19, %v1588_v19 }
 0x149   :  { %v913_v10 = vadd.f32 %v912_v9, %v850_v27  ;;  %v778_v12 = vadd.f32 %v1570_v5, %v777_v6  ;;  %v855_v5 = vmul.f32 %v1600_v32, %v1600_v32 }
 0x14b   :  { %v779_v62 = vadd.f32 %v778_v12, %v1594_v25  ;;  %v914_v15 = vadd.f32 %v913_v10, %v851_v39 }
 0x14d   :  { %v915_v1 = vadd.f32 %v914_v15, %v852_v16  ;;  %v780_v13 = vadd.f32 %v779_v62, %v1609_v38 }
 0x14f   :  { %v781_v18 = vadd.f32 %v1588_v19, %v780_v13  ;;  %v916_v11 = vadd.f32 %v915_v1, %v853_v17  ;;  %v719_v19 = vld [vmem:[%s1723_s3] sm:$0x1] }
 0x151   :  { %v782_v22 = vadd.f32 %v1600_v32, %v781_v18  ;;  %v917_v23 = vadd.f32 %v916_v11, %v854_v54  ;;  %v791_v32 = vld [vmem:[%s1724_s4] sm:$0x1] }
 0x153   :  { %v783_v25 = vrot.slane %v782_v22, 4  ;;  %v918_v26 = vadd.f32 %v917_v23, %v855_v5 }
 0x155   :  { %v784_v24 = vadd.f32 %v783_v25, %v782_v22  ;;  %v919_v28 = vrot.slane %v918_v26, 4 }
 0x157   :  { %v785_v29 = vrot.slane %v784_v24, 2  ;;  %v920_v36 = vadd.f32 %v919_v28, %v918_v26 }
 0x159   :  { %v786_v30 = vadd.f32 %v785_v29, %v784_v24  ;;  %v921_v38 = vrot.slane %v920_v36, 2 }
 0x15b   :  { %v787_v21 = vrot.slane %v786_v30, 1  ;;  %v922_v34 = vadd.f32 %v921_v38, %v920_v36 }
 0x15d   :  { %v788_v35 = vadd.f32 %v787_v21, %v786_v30  ;;  %v923_v31 = vrot.slane %v922_v34, 1 }
 0x15f   :  { %v789_v37 = vadd.f32 %v788_v35, %v719_v19  ;;  %v924_v40 = vadd.f32 %v923_v31, %v922_v34 }
 0x161   :  { %790 = vst [vmem:[%s1723_s3] sm:$0x1] %v789_v37  ;;  %v925_v47 = vadd.f32 %v924_v40, %v791_v32 }
 0x163   :  { %926 = vst [vmem:[%s1724_s4] sm:$0x1] %v925_v47 }

</bundles_post_ra>
